<compile_context>
chip_gen: v7x
topology: tpu7x:2x2x1
jax: 0.10.0
libtpu: 0.0.40
codegen_flags: <defaults>
</compile_context>

<pallas_src>
import functools
import math

import jax
import jax.numpy as jnp
from jax.experimental import pallas as pl
from jax.experimental.pallas import tpu as pltpu

_LANE = 128
_SUBLANE = 8


def _round_up(x, m):
    return (x + m - 1) // m * m


def _pad_last(a, size):
    pad = size - a.shape[-1]
    if pad == 0:
        return a
    return jnp.pad(a, [(0, 0)] * (a.ndim - 1) + [(0, pad)])


def _pad_rows(a, size):
    pad = size - a.shape[0]
    if pad == 0:
        return a
    return jnp.pad(a, [(0, pad)] + [(0, 0)] * (a.ndim - 1))


@functools.lru_cache(maxsize=None)
def _vmem_limit_bytes():
    """Usable scoped-VMEM budget, derived from the actual chip when possible."""
    try:
        cap = int(pltpu.get_tpu_info().vmem_capacity_bytes)
    except Exception:
        cap = 64 << 20  # v7x per-core VMEM: the most conservative choice
    return min(100 << 20, int(0.85 * cap))


# ---------------------------------------------------------------------------
# Primary path: the whole MLP in one pallas_call, weights VMEM-resident.
# ---------------------------------------------------------------------------

def _fused_mlp_kernel(v1_ref, v2_ref, w1_ref, b1_ref, w2_ref, b2_ref,
                      w3_ref, b3_ref, o_ref):
    """y = sigmoid(relu(relu([v1|v2] @ W1 + b1) @ W2 + b2) @ W3 + b3).

    v1/v2: [tm, F] bf16 batch tiles.  Weights bf16, biases f32, all resident.
    Intermediates never leave VMEM; matmuls accumulate in f32 on the MXU.
    """
    f = v1_ref.shape[1]
    # Layer 1 -- concat-free: W1's rows are split between v1 and v2.
    h = jnp.dot(v1_ref[...], w1_ref[pl.ds(0, f), :],
                preferred_element_type=jnp.float32)
    h = h + jnp.dot(v2_ref[...], w1_ref[pl.ds(f, f), :],
                    preferred_element_type=jnp.float32)
    h = jnp.maximum(h + b1_ref[...], 0.0).astype(jnp.bfloat16)
    # Layer 2.
    h = jnp.dot(h, w2_ref[...], preferred_element_type=jnp.float32)
    h = jnp.maximum(h + b2_ref[...], 0.0).astype(jnp.bfloat16)
    # Layer 3 + sigmoid (output lanes padded to a 128 multiple by the caller).
    y = jnp.dot(h, w3_ref[...], preferred_element_type=jnp.float32)
    o_ref[...] = jax.nn.sigmoid(y + b3_ref[...]).astype(o_ref.dtype)


def _fused_mlp(v1, v2, w1, b1, w2, b2, w3, b3, *, tm, vmem_limit):
    Bp, F = v1.shape
    Np = w3.shape[1]

    res = lambda m: (0, 0)   # weights/biases: resident, never re-fetched
    row = lambda m: (m, 0)   # activations / output: batch-tiled

    weight_bytes = sum(int(a.size) * a.dtype.itemsize
                       for a in (w1, b1, w2, b2, w3, b3))
    cost = pl.CostEstimate(
        flops=2 * Bp * F * (3 * F + Np),
        transcendentals=Bp * Np,
        bytes_accessed=weight_bytes + 2 * Bp * F * v1.dtype.itemsize + Bp * Np * 4,
    )

    return pl.pallas_call(
        _fused_mlp_kernel,
        out_shape=jax.ShapeDtypeStruct((Bp, Np), jnp.float32),
        grid_spec=pltpu.PrefetchScalarGridSpec(
            num_scalar_prefetch=0,
            grid=(Bp // tm,),
            in_specs=[
                pl.BlockSpec((tm, F), row),     # v1 (bf16)
                pl.BlockSpec((tm, F), row),     # v2 (bf16)
                pl.BlockSpec(w1.shape, res),    # W1 [2F, F]
                pl.BlockSpec(b1.shape, res),    # b1 [1, F]
                pl.BlockSpec(w2.shape, res),    # W2 [F, F]
                pl.BlockSpec(b2.shape, res),    # b2 [1, F]
                pl.BlockSpec(w3.shape, res),    # W3 [F, Np]
                pl.BlockSpec(b3.shape, res),    # b3 [1, Np]
            ],
            out_specs=pl.BlockSpec((tm, Np), row),
        ),
        compiler_params=pltpu.CompilerParams(
            dimension_semantics=("parallel",),
            vmem_limit_bytes=int(vmem_limit),
        ),
        cost_estimate=cost,
    )(v1, v2, w1, b1, w2, b2, w3, b3)


# ---------------------------------------------------------------------------
# Fallback path (huge features_size only): per-layer matmul with streamed
# bf16 weight tiles; f32 output block doubles as the K-accumulator.
# ---------------------------------------------------------------------------

def _linear_kernel(x_ref, w_ref, b_ref, o_ref, *, activation, tk):
    k = pl.program_id(1)
    start = pl.multiple_of(k * tk, tk)
    partial = jnp.dot(x_ref[:, pl.ds(start, tk)], w_ref[...],
                      preferred_element_type=jnp.float32)

    @pl.when(k == 0)
    def _():
        o_ref[...] = partial

    @pl.when(k > 0)
    def _():
        o_ref[...] += partial

    @pl.when(k == pl.num_programs(1) - 1)
    def _():
        y = o_ref[...] + b_ref[...]
        if activation == "relu":
            y = jnp.maximum(y, 0.0)
        elif activation == "sigmoid":
            y = jax.nn.sigmoid(y)
        o_ref[...] = y


def _pick_tile(dim, cap):
    """Largest 128-aligned divisor of dim that is <= cap (dim itself if small)."""
    if dim <= cap:
        return dim
    t = (cap // _LANE) * _LANE
    while t >= _LANE:
        if dim % t == 0:
            return t
        t -= _LANE
    return dim  # unreachable: callers pad all tiled dims to 128 multiples


def _streamed_linear(x, w, b, *, activation, tile_cap, buffers, vmem_limit):
    M, K = x.shape
    _, N = w.shape
    tn = _pick_tile(N, tile_cap)
    tk = _pick_tile(K, tile_cap)

    def w_spec():
        try:  # deeper weight pipelining (v7x); fall back if unsupported
            return pl.BlockSpec((tk, tn), lambda j, k: (k, j),
                                pipeline_mode=pl.Buffered(buffers))
        except Exception:
            return pl.BlockSpec((tk, tn), lambda j, k: (k, j))

    cost = pl.CostEstimate(
        flops=2 * M * N * K,
        transcendentals=M * N if activation == "sigmoid" else 0,
        bytes_accessed=int(w.size) * 2 + int(x.size) * 2 + int(b.size) * 4 + M * N * 4,
    )

    return pl.pallas_call(
        functools.partial(_linear_kernel, activation=activation, tk=tk),
        out_shape=jax.ShapeDtypeStruct((M, N), jnp.float32),
        grid_spec=pltpu.PrefetchScalarGridSpec(
            num_scalar_prefetch=0,
            grid=(N // tn, K // tk),                       # K (reduction) last
            in_specs=[
                pl.BlockSpec((M, K), lambda j, k: (0, 0)),  # x resident (bf16)
                w_spec(),                                   # weight tile stream
                pl.BlockSpec((1, tn), lambda j, k: (0, j)),
            ],
            out_specs=pl.BlockSpec((M, tn), lambda j, k: (0, j)),
        ),
        compiler_params=pltpu.CompilerParams(
            dimension_semantics=("parallel", "arbitrary"),
            vmem_limit_bytes=int(vmem_limit),
        ),
        cost_estimate=cost,
    )(x, w, b)


def _streamed_forward(v1, v2, params, vmem_limit):
    (w1, b1), (w2, b2), (w3, b3) = params
    B, F = v1.shape
    big_vmem = vmem_limit >= (80 << 20)
    tile_cap = 2048 if big_vmem else 1024   # v5e/v6e: bigger tiles; v7x: 1024
    buffers = 2 if big_vmem else 3

    x = jnp.concatenate([v1, v2], axis=1)   # [B, 2F] bf16 (fallback path only)
    Fp = _round_up(F, _LANE)
    if Fp != F:  # pad hidden dims to lane multiples so tiles stay 128-aligned
        x = _pad_last(x, 2 * Fp)
        w1 = _pad_last(_pad_rows(w1, 2 * Fp), Fp)
        b1 = _pad_last(b1, Fp)
        w2 = _pad_last(_pad_rows(w2, Fp), Fp)
        b2 = _pad_last(b2, Fp)
        w3 = _pad_rows(w3, Fp)

    h = _streamed_linear(x, w1, b1, activation="relu",
                         tile_cap=tile_cap, buffers=buffers, vmem_limit=vmem_limit)
    h = _streamed_linear(h.astype(jnp.bfloat16), w2, b2, activation="relu",
                         tile_cap=tile_cap, buffers=buffers, vmem_limit=vmem_limit)
    return _streamed_linear(h.astype(jnp.bfloat16), w3, b3, activation="sigmoid",
                            tile_cap=tile_cap, buffers=buffers, vmem_limit=vmem_limit)


# ---------------------------------------------------------------------------
# Public API
# ---------------------------------------------------------------------------

def init_params(key, features_size, output_flat,
                weight_dtype=jnp.bfloat16, bias_dtype=jnp.float32):
    """PyTorch nn.Linear default init: U(-1/sqrt(fan_in), +1/sqrt(fan_in)).

    Weights stored [in, out] (transpose of PyTorch) in bf16; biases f32.
    The final layer is zero-padded to a 128-lane multiple so the kernel's
    output stores are lane-dense; the wrapper slices the padding off.
    """
    out_pad = _round_up(output_flat, _LANE)
    dims = [(2 * features_size, features_size, features_size),
            (features_size, features_size, features_size),
            (features_size, output_flat, out_pad)]
    params = []
    for i, (fan_in, fan_out, fan_out_pad) in enumerate(dims):
        kw, kb = jax.random.split(jax.random.fold_in(key, i))
        bound = 1.0 / math.sqrt(fan_in)
        w = jax.random.uniform(kw, (fan_in, fan_out), jnp.float32, -bound, bound)
        b = jax.random.uniform(kb, (1, fan_out), jnp.float32, -bound, bound)
        if fan_out_pad != fan_out:
            w = jnp.pad(w, ((0, 0), (0, fan_out_pad - fan_out)))
            b = jnp.pad(b, ((0, 0), (0, fan_out_pad - fan_out)))
        params.append((w.astype(weight_dtype), b.astype(bias_dtype)))
    return params


@functools.partial(jax.jit, static_argnames=("output_flat",))
def sigmoid_compare_prop_net(v1, v2, params, *, output_flat):
    """Eval-mode forward. v1, v2: [B, features_size] -> [B, output_flat]."""
    # nn.Dropout() -> identity in eval mode.
    # TODO(synk): train-mode stochastic dropout (pltpu.prng_* masks in-kernel).
    B, F = v1.shape
    assert v2.shape == (B, F), (v1.shape, v2.shape)
    (w1, b1), (w2, b2), (w3, b3) = params
    Np = w3.shape[1]

    v1 = v1.astype(jnp.bfloat16)
    v2 = v2.astype(jnp.bfloat16)

    # Batch tiling: >=2 "parallel" tiles when possible (v7x megacore), cap 256.
    if B <= _SUBLANE:
        tm = B
    else:
        tm = min(256, _round_up((B + 1) // 2, _SUBLANE))
    Bp = _round_up(B, tm)

    # Conservative resident-VMEM estimate (assume everything double-buffered).
    weight_bytes = sum(int(a.size) * a.dtype.itemsize for p in params for a in p)
    need = 2 * weight_bytes + 2 * (2 * tm * F * 2) + 2 * (tm * Np * 4) + (2 << 20)
    vmem_limit = _vmem_limit_bytes()

    if need <= vmem_limit:
        if Bp != B:
            v1 = _pad_rows(v1, Bp)
            v2 = _pad_rows(v2, Bp)
        out = _fused_mlp(v1, v2, w1, b1, w2, b2, w3, b3,
                         tm=tm, vmem_limit=vmem_limit)
        out = out[:B]
    else:
        # Weights too large to keep resident: stream them per layer instead.
        out = _streamed_forward(v1, v2, params, vmem_limit)
    return out[:, :output_flat]


if __name__ == "__main__":
    key = jax.random.PRNGKey(0)

    batch = 2
    features_size = 32          # each input vector: [B, 32]
    output_dim = (4, 4)         # prod -> 16 outputs
    output_flat = math.prod(output_dim)

    k1, k2, kp = jax.random.split(key, 3)
    v1 = jax.random.normal(k1, (batch, features_size), jnp.float32)
    v2 = jax.random.normal(k2, (batch, features_size), jnp.float32)
    params = init_params(kp, features_size, output_flat)

    out = sigmoid_compare_prop_net(v1, v2, params, output_flat=output_flat)
    out = jax.block_until_ready(out)

    assert out.shape == (batch, output_flat), out.shape
    assert bool(jnp.all(jnp.isfinite(out)))
    assert bool(jnp.all((out >= 0.0) & (out <= 1.0)))

    # Pure-JAX f32 reference (bf16 weights/activations => loose tolerance).
    (w1, b1), (w2, b2), (w3, b3) = params
    x = jnp.concatenate([v1, v2], axis=1)
    h = jax.nn.relu(x @ w1.astype(jnp.float32) + b1)
    h = jax.nn.relu(h @ w2.astype(jnp.float32) + b2)
    ref = jax.nn.sigmoid(h @ w3.astype(jnp.float32) + b3)[:, :output_flat]
    assert bool(jnp.allclose(out, ref, atol=5e-2)), float(jnp.max(jnp.abs(out - ref)))

    print("KERNEL_OK")
</pallas_src>

<mosaic_0001>
module attributes {stable_mosaic.version = 11 : i64} {
  func.func @_fused_mlp_kernel(%arg0: i32, %arg1: memref<2x32xbf16, #tpu.memory_space<vmem>>, %arg2: memref<2x32xbf16, #tpu.memory_space<vmem>>, %arg3: memref<64x32xbf16, #tpu.memory_space<vmem>>, %arg4: memref<1x32xf32, #tpu.memory_space<vmem>>, %arg5: memref<32x32xbf16, #tpu.memory_space<vmem>>, %arg6: memref<1x32xf32, #tpu.memory_space<vmem>>, %arg7: memref<32x128xbf16, #tpu.memory_space<vmem>>, %arg8: memref<1x128xf32, #tpu.memory_space<vmem>>, %arg9: memref<2x128xf32, #tpu.memory_space<vmem>>) attributes {dimension_semantics = [#tpu.dimension_semantics<parallel>], iteration_bounds = array<i64: 1>, scalar_prefetch = 0 : i64, scratch_operands = 0 : i64, tpu.core_type = #tpu.core_type<tc>, window_params = [{transform_indices = @transform_0, window_bounds = array<i64: 2, 32>}, {transform_indices = @transform_1, window_bounds = array<i64: 2, 32>}, {pipeline_mode = #tpu.pipeline_mode<synchronous>, transform_indices = @transform_2, window_bounds = array<i64: 64, 32>}, {pipeline_mode = #tpu.pipeline_mode<synchronous>, transform_indices = @transform_3, window_bounds = array<i64: 1, 32>}, {pipeline_mode = #tpu.pipeline_mode<synchronous>, transform_indices = @transform_4, window_bounds = array<i64: 32, 32>}, {pipeline_mode = #tpu.pipeline_mode<synchronous>, transform_indices = @transform_5, window_bounds = array<i64: 1, 32>}, {pipeline_mode = #tpu.pipeline_mode<synchronous>, transform_indices = @transform_6, window_bounds = array<i64: 32, 128>}, {pipeline_mode = #tpu.pipeline_mode<synchronous>, transform_indices = @transform_7, window_bounds = array<i64: 1, 128>}, {transform_indices = @transform_8, window_bounds = array<i64: 2, 128>}]} {
    %c0 = arith.constant 0 : index
    %c0_0 = arith.constant 0 : index
    %0 = vector.load %arg1[%c0, %c0_0] : memref<2x32xbf16, #tpu.memory_space<vmem>>, vector<2x32xbf16>
    %c0_1 = arith.constant 0 : index
    %c0_2 = arith.constant 0 : index
    %1 = vector.load %arg3[%c0_1, %c0_2] : memref<64x32xbf16, #tpu.memory_space<vmem>>, vector<32x32xbf16>
    %cst = arith.constant dense<0.000000e+00> : vector<2x32xf32>
    %2 = tpu.matmul %0, %1, %cst {dimension_numbers = #tpu.dot_dimension_numbers<[1], [0], [0], [1], [0, 0, 1, 1], [], []>} : vector<2x32xbf16>, vector<32x32xbf16>, vector<2x32xf32> -> vector<2x32xf32>
    %c0_3 = arith.constant 0 : index
    %c0_4 = arith.constant 0 : index
    %3 = vector.load %arg2[%c0_3, %c0_4] : memref<2x32xbf16, #tpu.memory_space<vmem>>, vector<2x32xbf16>
    %c32 = arith.constant 32 : index
    %c0_5 = arith.constant 0 : index
    %4 = vector.load %arg3[%c32, %c0_5] : memref<64x32xbf16, #tpu.memory_space<vmem>>, vector<32x32xbf16>
    %cst_6 = arith.constant dense<0.000000e+00> : vector<2x32xf32>
    %5 = tpu.matmul %3, %4, %cst_6 {dimension_numbers = #tpu.dot_dimension_numbers<[1], [0], [0], [1], [0, 0, 1, 1], [], []>} : vector<2x32xbf16>, vector<32x32xbf16>, vector<2x32xf32> -> vector<2x32xf32>
    %6 = arith.addf %2, %5 : vector<2x32xf32>
    %c0_7 = arith.constant 0 : index
    %c0_8 = arith.constant 0 : index
    %7 = vector.load %arg4[%c0_7, %c0_8] : memref<1x32xf32, #tpu.memory_space<vmem>>, vector<1x32xf32>
    %8 = vector.broadcast %7 : vector<1x32xf32> to vector<2x32xf32>
    %9 = arith.addf %6, %8 : vector<2x32xf32>
    %cst_9 = arith.constant 0.000000e+00 : f32
    %10 = vector.broadcast %cst_9 : f32 to vector<2x32xf32>
    %11 = arith.maximumf %9, %10 : vector<2x32xf32>
    %12 = arith.truncf %11 : vector<2x32xf32> to vector<2x32xbf16>
    %c0_10 = arith.constant 0 : index
    %c0_11 = arith.constant 0 : index
    %13 = vector.load %arg5[%c0_10, %c0_11] : memref<32x32xbf16, #tpu.memory_space<vmem>>, vector<32x32xbf16>
    %cst_12 = arith.constant dense<0.000000e+00> : vector<2x32xf32>
    %14 = tpu.matmul %12, %13, %cst_12 {dimension_numbers = #tpu.dot_dimension_numbers<[1], [0], [0], [1], [0, 0, 1, 1], [], []>} : vector<2x32xbf16>, vector<32x32xbf16>, vector<2x32xf32> -> vector<2x32xf32>
    %c0_13 = arith.constant 0 : index
    %c0_14 = arith.constant 0 : index
    %15 = vector.load %arg6[%c0_13, %c0_14] : memref<1x32xf32, #tpu.memory_space<vmem>>, vector<1x32xf32>
    %16 = vector.broadcast %15 : vector<1x32xf32> to vector<2x32xf32>
    %17 = arith.addf %14, %16 : vector<2x32xf32>
    %cst_15 = arith.constant 0.000000e+00 : f32
    %18 = vector.broadcast %cst_15 : f32 to vector<2x32xf32>
    %19 = arith.maximumf %17, %18 : vector<2x32xf32>
    %20 = arith.truncf %19 : vector<2x32xf32> to vector<2x32xbf16>
    %c0_16 = arith.constant 0 : index
    %c0_17 = arith.constant 0 : index
    %21 = vector.load %arg7[%c0_16, %c0_17] : memref<32x128xbf16, #tpu.memory_space<vmem>>, vector<32x128xbf16>
    %cst_18 = arith.constant dense<0.000000e+00> : vector<2x128xf32>
    %22 = tpu.matmul %20, %21, %cst_18 {dimension_numbers = #tpu.dot_dimension_numbers<[1], [0], [0], [1], [0, 0, 1, 1], [], []>} : vector<2x32xbf16>, vector<32x128xbf16>, vector<2x128xf32> -> vector<2x128xf32>
    %c0_19 = arith.constant 0 : index
    %c0_20 = arith.constant 0 : index
    %23 = vector.load %arg8[%c0_19, %c0_20] : memref<1x128xf32, #tpu.memory_space<vmem>>, vector<1x128xf32>
    %24 = vector.broadcast %23 : vector<1x128xf32> to vector<2x128xf32>
    %25 = arith.addf %22, %24 : vector<2x128xf32>
    %26 = arith.negf %25 : vector<2x128xf32>
    %27 = math.exp %26 : vector<2x128xf32>
    %cst_21 = arith.constant 1.000000e+00 : f32
    %28 = vector.broadcast %cst_21 : f32 to vector<2x128xf32>
    %29 = arith.addf %28, %27 : vector<2x128xf32>
    %30 = arith.divf %28, %29 : vector<2x128xf32>
    %c0_22 = arith.constant 0 : index
    %c0_23 = arith.constant 0 : index
    %31 = vector.load %arg9[%c0_22, %c0_23] : memref<2x128xf32, #tpu.memory_space<vmem>>, vector<2x128xf32>
    tpu.vector_store %arg9[%c0_22, %c0_23], %30 {strides = array<i32>} : memref<2x128xf32, #tpu.memory_space<vmem>>, vector<2x128xf32>,
    return
  }
  func.func @transform_0(%arg0: i32) -> (i32, i32) {
    %c0_i32 = arith.constant 0 : i32
    %c0_i32_0 = arith.constant 0 : i32
    return %arg0, %c0_i32 : i32, i32
  }
  func.func @transform_1(%arg0: i32) -> (i32, i32) {
    %c0_i32 = arith.constant 0 : i32
    %c0_i32_0 = arith.constant 0 : i32
    return %arg0, %c0_i32 : i32, i32
  }
  func.func @transform_2(%arg0: i32) -> (i32, i32) {
    %c0_i32 = arith.constant 0 : i32
    %c0_i32_0 = arith.constant 0 : i32
    %c0_i32_1 = arith.constant 0 : i32
    return %c0_i32, %c0_i32_0 : i32, i32
  }
  func.func @transform_3(%arg0: i32) -> (i32, i32) {
    %c0_i32 = arith.constant 0 : i32
    %c0_i32_0 = arith.constant 0 : i32
    %c0_i32_1 = arith.constant 0 : i32
    return %c0_i32, %c0_i32_0 : i32, i32
  }
  func.func @transform_4(%arg0: i32) -> (i32, i32) {
    %c0_i32 = arith.constant 0 : i32
    %c0_i32_0 = arith.constant 0 : i32
    %c0_i32_1 = arith.constant 0 : i32
    return %c0_i32, %c0_i32_0 : i32, i32
  }
  func.func @transform_5(%arg0: i32) -> (i32, i32) {
    %c0_i32 = arith.constant 0 : i32
    %c0_i32_0 = arith.constant 0 : i32
    %c0_i32_1 = arith.constant 0 : i32
    return %c0_i32, %c0_i32_0 : i32, i32
  }
  func.func @transform_6(%arg0: i32) -> (i32, i32) {
    %c0_i32 = arith.constant 0 : i32
    %c0_i32_0 = arith.constant 0 : i32
    %c0_i32_1 = arith.constant 0 : i32
    return %c0_i32, %c0_i32_0 : i32, i32
  }
  func.func @transform_7(%arg0: i32) -> (i32, i32) {
    %c0_i32 = arith.constant 0 : i32
    %c0_i32_0 = arith.constant 0 : i32
    %c0_i32_1 = arith.constant 0 : i32
    return %c0_i32, %c0_i32_0 : i32, i32
  }
  func.func @transform_8(%arg0: i32) -> (i32, i32) {
    %c0_i32 = arith.constant 0 : i32
    %c0_i32_0 = arith.constant 0 : i32
    return %arg0, %c0_i32 : i32, i32
  }
}

</mosaic_0001>

<bundles_post_ra>
// kernel: sigmoid_compare_prop_net.1
= control target key start
LH: loop header
LB: loop body
LE: loop exit
PB: predicated region body
PF: predicated region fallthrough
CT: control target
= control target key end

     0   :  { %v416_v1 = vmov 0.0   ;;  %vm417_vm0 = vmmov 0   ;;  %vm53_vm1 = vcmask 261120   ;;  %s523_s0 = inlined_call_operand.vmem [shape: bf16[2,32], index: 0, kind: input, shape index: {}]   ;;  %s524_s1 = inlined_call_operand.vmem [shape: bf16[2,32], index: 1, kind: input, shape index: {}]   ;;  %s525_s2 = inlined_call_operand.vmem [shape: bf16[64,32], index: 2, kind: input, shape index: {}]   ;;  %s526_s3 = inlined_call_operand.vmem [shape: f32[1,32], index: 3, kind: input, shape index: {}]   ;;  %s527_s4 = inlined_call_operand.vmem [shape: bf16[32,32], index: 4, kind: input, shape index: {}]   ;;  %s528_s5 = inlined_call_operand.vmem [shape: f32[1,32], index: 5, kind: input, shape index: {}]   ;;  %s529_s6 = inlined_call_operand.vmem [shape: bf16[32,128], index: 6, kind: input, shape index: {}]   ;;  %s530_s7 = inlined_call_operand.vmem [shape: f32[1,128], index: 7, kind: input, shape index: {}]   ;;  %s531_s8 = inlined_call_operand.hbm [shape: f32[2,128], index: 8, kind: output, shape index: {}]  }
   0x1   :  { %v380_v0 = vld [vmem:[%s525_s2 + $0x10] sm:$0xff]   ;;  %345 = vmatprep.subr.bf16.mxu0 %v416_v1  ;;  %353 = vmatprep.subr.bf16.mxu1 %v416_v1  ;;  %v381_v2 = vld [vmem:[%s525_s2] sm:$0xff]   ;;  %v382_v3 = vld [vmem:[%s525_s2 + $0x18] sm:$0xff]  }
   0x2   :  { %346 = vmatpush3.bf16.msra.mxu0 %v380_v0  ;;  %349 = vmatprep.mubr.msk.bf16.mxu0 %vm417_vm0, %v416_v1  ;;  %v383_v4 = vld [vmem:[%s525_s2 + $0x8] sm:$0xff]   ;;  %v36_v5 = vld [vmem:[%s524_s1] sm:$0x1] }
   0x3   :  { %354 = vmatpush3.bf16.msra.mxu1 %v381_v2  ;;  %347 = vmatprep.subr.bf16.mxu0 %v416_v1  ;;  %v31_v6 = vld [vmem:[%s523_s0] sm:$0x1] }
   0x4   :  { %355 = vmatprep.subr.bf16.mxu1 %v416_v1  ;;  %357 = vmatprep.mubr.msk.bf16.mxu1 %vm417_vm0, %v416_v1 }
   0x6   :  { %348 = vmatpush3.bf16.msra.mxu0 %v382_v3 }
   0x7   :  { %356 = vmatpush3.bf16.msra.mxu1 %v383_v4  ;;  %361 = vmatprep.subr.bf16.mxu0 %v416_v1 }
   0x8   :  { %13 = vsyncpa [#allocation3], 0  ;;  %369 = vmatprep.subr.bf16.mxu1 %v416_v1  ;;  %v384_v7 = vld [vmem:[%s527_s4] sm:$0xff]   ;;  %v385_v8 = vld [vmem:[%s527_s4 + $0x8] sm:$0xff]  }
   0x9   :  { %350 = vmatmul.mubr.msk.bf16.vlgmr.msra.gmra.mrb[0].mxu0 %vm53_vm1, %v36_v5  ;;  %v386_v9 = vld [vmem:[%s529_s6] sm:$0xff]   ;;  %v387_v23 = vld [vmem:[%s529_s6 + $0x8] sm:$0xff]  }
   0xa   :  { %358 = vmatmul.mubr.msk.bf16.vlgmr.msra.gmra.mrb[0].mxu1 %vm53_vm1, %v31_v6  ;;  %365 = vmatprep.mubr.msk.bf16.mxu0 %vm417_vm0, %v416_v1  ;;  %v323_v12 = vld [vmem:[%s526_s3] ss:$0 sm:$0xff] }
   0xb   :  { %373 = vmatprep.mubr.msk.bf16.mxu1 %vm417_vm0, %v416_v1  ;;  %362 = vmatpush3.bf16.msra.mxu0 %v384_v7  ;;  %v324_v24 = vld [vmem:[%s528_s5] ss:$0 sm:$0xff]  ;;  %s418_s5 = smov [#allocation2]  }
   0xc   :  { %363 = vmatprep.subr.bf16.mxu0 %v416_v1  ;;  %370 = vmatpush3.bf16.msra.mxu1 %v386_v9  ;;  %v328_v32 = vld [vmem:[%s530_s7] ss:$0 sm:$0xff]  ;;  %s309_s6 = sshll.u32 %s418_s5, 4  ;;  %s310_s6 = int_to_ptr.vmem [resolvable:$true] %s309_s6 }
   0xd   :  { %371 = vmatprep.subr.bf16.mxu1 %v416_v1  ;;  %s392_s26 = scalar_lea.vmem %s310_s6, 32  ;;  %p397_p1 = scmp.lt.s32.totalorder %s310_s6, %s310_s6 }
   0xe   :  { %p393_p0 = scmp.ne.s32.totalorder %s310_s6, %s392_s26  ;;  %p398_p2 = scmp.lt.s32.totalorder %s392_s26, %s392_s26 }
   0xf   :  { %364 = vmatpush3.bf16.msra.mxu0 %v385_v8 }
  0x10   :  { %372 = vmatpush3.bf16.msra.mxu1 %v387_v23  ;;  %p399_p3 = por %p398_p2, %p397_p1 }
  0x12   :  { %p400_p4 = pnand %p399_p3, %p393_p0 }
  0xdc   :  { %v91_v10 = vpop.f32.mrb[0].mxu0 }
  0xdd   :  { %v146_v11 = vpop.f32.mrb[0].mxu1  ;;  %v351_v13 = vpop.f32.mrb[1].mxu0 }
  0xde   :  { %v147_v14 = vadd.f32 %v146_v11, %v91_v10  ;;  %v359_v15 = vpop.f32.mrb[1].mxu1  ;;  %v94_v16 = vpop.f32.mrb[2].mxu0 }
  0xdf   :  { %v149_v17 = vpop.f32.mrb[2].mxu1  ;;  %v352_v18 = vpop.f32.mrb[3].mxu0 }
  0xe0   :  { %v159_v19 = vadd.f32 %v323_v12, %v147_v14  ;;  %v360_v20 = vpop.f32.mrb[3].mxu1 }
  0xe2   :  { %v160_v21 = vmax.f32 %v159_v19, 0.0 }
  0xe4   :  { %v161_v22 = vpack.c.bf16 %v160_v21, %v160_v21 }
  0xe6   :  { %366 = vmatmul.mubr.msk.bf16.vlgmr.msra.gmra.mrb[4].mxu0 %vm53_vm1, %v161_v22 }
 0x1b9   :  { %v222_v25 = vpop.f32.mrb[4].mxu0 }
 0x1ba   :  { %v223_v26 = vadd.f32 %v324_v24, %v222_v25  ;;  %v367_v27 = vpop.f32.mrb[5].mxu0 }
 0x1bb   :  { %v225_v28 = vpop.f32.mrb[6].mxu0 }
 0x1bc   :  { %v228_v29 = vmax.f32 %v223_v26, 0.0  ;;  %v368_v30 = vpop.f32.mrb[7].mxu0 }
 0x1be   :  { %v229_v31 = vpack.c.bf16 %v228_v29, %v228_v29 }
 0x1c0   :  { %374 = vmatmul.mubr.msk.bf16.vlgmr.msra.gmra.mrb[4].mxu1 %vm53_vm1, %v229_v31 }
 0x293   :  { %v290_v33 = vpop.f32.mrb[4].mxu1 }
 0x294   :  { %v291_v34 = vadd.f32 %v328_v32, %v290_v33  ;;  %v375_v35 = vpop.f32.mrb[5].mxu1 }
 0x295   :  { %v293_v36 = vpop.f32.mrb[6].mxu1 }
 0x296   :  { %v332_v37 = vmul.f32 -1.442695, %v291_v34  ;;  %v376_v38 = vpop.f32.mrb[7].mxu1 }
 0x298   :  { %388 = vpow2.f32 %v332_v37 }
 0x2a2   :  { %v389_v39 = vpop.eup %388 }
 0x2a3   :  { %v299_v40 = vadd.f32 1.0, %v389_v39 }
 0x2a5   :  { %390 = vrcp.f32 %v299_v40 }
 0x2af   :  { %v391_v41 = vpop.eup %390 }
 0x2b0   :  { %302 = vst [vmem:[#allocation2] sm:$0x3] %v391_v41 }
 0x2b1   :  { %403 = shalt.err (!%p400_p4)
}
 0x2b2   :  { %s404_s28 = scalar_lea.hbm %s531_s8, 32 }
 0x2b3   :  { %p405_p5 = scmp.ne.s32.totalorder %s531_s8, %s404_s28  ;;  %p408_p6 = scmp.lt.u32.totalorder %s404_s28, %s531_s8 }
 0x2b5   :  { %p410_p7 = pnand %p408_p6, %p405_p5 }
 0x2b7   :  { %413 = shalt.err (!%p410_p7)
}
 0x2b8   :  { %312 = dma.vmem_to_hbm [thread:$0]  %s310_s6, 32, %s531_s8, [#allocation3]  }
 0x2b9   :  { %414 = dma.done.wait [#allocation3], 32  }
 0x2ba   :  { %415 = vsyncadd [#allocation3], 4294967264 }
 0x2bb   :  { %316 = vsyncpa [#allocation3], 1 }

</bundles_post_ra>
